<compile_context>
chip_gen: v7x
topology: tpu7x:2x2x1
jax: 0.10.0
libtpu: 0.0.40
codegen_flags: <defaults>
</compile_context>

<pallas_src>
import functools

import jax
import jax.numpy as jnp
from jax.experimental import pallas as pl
from jax.experimental.pallas import tpu as pltpu


def _cdiv(a: int, b: int) -> int:
    return -(-a // b)


def _round_up(x: int, m: int) -> int:
    return _cdiv(x, m) * m


# ----------------------------------------------------------------------------------------------
# Kernels
# ----------------------------------------------------------------------------------------------

def _fused_kernel(x_ref, w_ref, *rest, has_bias: bool):
    # x_ref: (TB, Din)   w_ref: (Din, TN)   [b_ref: (1, TN)]   o_ref: (TB, TN)
    if has_bias:
        b_ref, o_ref = rest
    else:
        (o_ref,) = rest
    acc = jnp.dot(x_ref[...], w_ref[...], preferred_element_type=jnp.float32)   # MXU, f32 accum
    if has_bias:
        acc = acc + b_ref[...].astype(jnp.float32)
    o_ref[...] = acc.astype(o_ref.dtype)


def _fused_kernel_ktiled(x_ref, w_ref, *rest, has_bias: bool):
    # Reduction over the K (=Din) grid axis (last, "arbitrary") into an f32 VMEM accumulator.
    if has_bias:
        b_ref, o_ref, acc_ref = rest
    else:
        o_ref, acc_ref = rest
    k = pl.program_id(2)

    @pl.when(k == 0)
    def _():
        acc_ref[...] = jnp.zeros_like(acc_ref)

    acc_ref[...] += jnp.dot(x_ref[...], w_ref[...], preferred_element_type=jnp.float32)

    @pl.when(k == pl.num_programs(2) - 1)
    def _():
        acc = acc_ref[...]
        if has_bias:
            acc = acc + b_ref[...].astype(jnp.float32)
        o_ref[...] = acc.astype(o_ref.dtype)


# ----------------------------------------------------------------------------------------------
# One-time parameter relayout (hoist this out of the per-step path)
# ----------------------------------------------------------------------------------------------

def prepare_ensemble_readout_params(weight, bias=None, *, output_mult=1.0,
                                    base_width=None, dtype=None):
    """weight [L, Dout, Din] -> K-major fused [Din, L*Dout]; bias [L, 1, Dout] -> [1, L*Dout].

    The muP scale (output_mult / width_mult) is folded into the f32 weight here, so the kernel
    runs a plain matmul.  This is a full HBM pass over the weight: call it once (module init /
    outside the jitted step) and feed the result to ensemble_mu_readout_prepared so the kernel
    sees exactly one weight read per forward.
    """
    L, Dout, Din = weight.shape
    if base_width is None:
        base_width = Din                      # module default: _base_width = in_dim
    width_mult = float(Din) / float(base_width)
    scale = float(output_mult) / width_mult

    w = weight.astype(jnp.float32)
    if scale != 1.0:                          # trace-time fold; exact no-op in the default case
        w = w * scale
    w2d = jnp.transpose(w, (2, 0, 1)).reshape(Din, L * Dout)
    b2d = None if bias is None else bias.reshape(1, L * Dout)
    if dtype is not None:                     # matched operand dtypes -> full-rate MXU path
        w2d = w2d.astype(dtype)
        if b2d is not None:
            b2d = b2d.astype(dtype)
    return w2d, b2d


# ----------------------------------------------------------------------------------------------
# Tile selection (VMEM-budget driven, generation-safe)
# ----------------------------------------------------------------------------------------------

def _select_tiles(B, Din, N, itemsize, *, max_block_b, max_block_n,
                  block_k_threshold, max_block_k, vmem_budget):
    # Batch tile: balanced (minimizes zero-row padding), multiple of 8, capped by max_block_b.
    nb = max(1, _cdiv(B, max_block_b))
    tb = _round_up(_cdiv(B, nb), 8)

    # K tile: only split the contraction for very wide inputs.
    if Din > block_k_threshold:
        nk = max(1, _cdiv(Din, max_block_k))
        tk = _round_up(_cdiv(Din, nk), 128)
    else:
        tk = Din

    def working_set(tn):
        acc = 4 * tb * tn if tk != Din else 0           # f32 accumulator (K-tiled path only)
        # x / weight / bias / out tiles, all double-buffered by the Pallas pipeline.
        return itemsize * (2 * tb * tk + 2 * tk * tn + 2 * tn + 2 * tb * tn) + acc

    tn_cap = N if max_block_n is None else min(int(max_block_n), N)
    if tn_cap >= N and working_set(N) <= vmem_budget:
        return tb, N, tk                                 # single full-width fused block

    g = 256 if tn_cap >= 256 else 128                    # MXU lane granularity (256 v6e/v7x)
    tn = max(g, (tn_cap // g) * g)
    while tn > g and working_set(tn) > vmem_budget:
        tn -= g
    return tb, tn, tk


# ----------------------------------------------------------------------------------------------
# Forward
# ----------------------------------------------------------------------------------------------

def ensemble_mu_readout_prepared(x, w2d, b2d, num_ensemble, out_dim, *,
                                 max_block_b=512, max_block_n=None,
                                 block_k_threshold=4096, max_block_k=2048,
                                 vmem_budget_bytes=32 * 1024 * 1024,
                                 interpret=False):
    """x: [B, Din], w2d: [Din, L*Dout] (scale folded in), b2d: [1, L*Dout] or None -> [L, B, Dout]."""
    B, Din = x.shape
    Din_w, N = w2d.shape
    assert Din == Din_w, "in_dim mismatch between x and fused weight"
    assert N == num_ensemble * out_dim
    has_bias = b2d is not None

    dtype = x.dtype
    w2d = w2d.astype(dtype)
    if has_bias:
        b2d = b2d.astype(dtype)
    itemsize = jnp.dtype(dtype).itemsize

    tb, tn, tk = _select_tiles(
        B, Din, N, itemsize, max_block_b=max_block_b, max_block_n=max_block_n,
        block_k_threshold=block_k_threshold, max_block_k=max_block_k,
        vmem_budget=vmem_budget_bytes)

    Bp = _round_up(B, tb)
    Np = _round_up(N, tn)
    Kp = _round_up(Din, tk)
    num_b, num_n, num_k = Bp // tb, Np // tn, Kp // tk

    if Bp != B or Kp != Din:
        x = jnp.pad(x, ((0, Bp - B), (0, Kp - Din)))
    if Np != N or Kp != Din:
        # TODO(synk): when N or Din needs padding this copies the fused weight per call;
        # pre-pad it alongside prepare_ensemble_readout_params if that matters for your shapes.
        w2d = jnp.pad(w2d, ((0, Kp - Din), (0, Np - N)))
    if has_bias and Np != N:
        b2d = jnp.pad(b2d, ((0, 0), (0, Np - N)))

    cost = pl.CostEstimate(
        flops=2 * Bp * Kp * Np,
        transcendentals=0,
        bytes_accessed=itemsize * (Bp * Kp + Kp * Np + (Np if has_bias else 0) + Bp * Np))

    if num_k == 1:
        kernel = functools.partial(_fused_kernel, has_bias=has_bias)
        grid = (num_n, num_b)                      # batch innermost: each weight stripe DMA'd once
        in_specs = [pl.BlockSpec((tb, Kp), lambda j, i: (i, 0)),
                    pl.BlockSpec((Kp, tn), lambda j, i: (0, j))]
        if has_bias:
            in_specs.append(pl.BlockSpec((1, tn), lambda j, i: (0, j)))
        out_specs = pl.BlockSpec((tb, tn), lambda j, i: (i, j))
        scratch_shapes = ()
        dim_sem = ("parallel", "parallel")         # both axes shardable across TCs (v7x)
        acc_bytes = 0
    else:
        kernel = functools.partial(_fused_kernel_ktiled, has_bias=has_bias)
        grid = (num_n, num_b, num_k)               # reduction axis last, "arbitrary"
        in_specs = [pl.BlockSpec((tb, tk), lambda j, i, k: (i, k)),
                    pl.BlockSpec((tk, tn), lambda j, i, k: (k, j))]
        if has_bias:
            in_specs.append(pl.BlockSpec((1, tn), lambda j, i, k: (0, j)))
        out_specs = pl.BlockSpec((tb, tn), lambda j, i, k: (i, j))
        scratch_shapes = (pltpu.VMEM((tb, tn), jnp.float32),)
        dim_sem = ("parallel", "parallel", "arbitrary")
        acc_bytes = 4 * tb * tn

    # Explicit scoped-VMEM limit derived from the actual buffer sizes (double-buffered tiles),
    # capped at v7x's 64 MiB physical VMEM; floor at 32 MiB so tiny shapes keep ample headroom.
    working_set = itemsize * (2 * tb * tk + 2 * tk * tn + 2 * tn + 2 * tb * tn) + acc_bytes
    vmem_limit = min(64 * 1024 * 1024,
                     max(32 * 1024 * 1024, int(working_set * 1.25) + (2 << 20)))

    args = (x, w2d) + ((b2d,) if has_bias else ())
    out2d = pl.pallas_call(
        kernel,
        out_shape=jax.ShapeDtypeStruct((Bp, Np), dtype),
        grid_spec=pltpu.PrefetchScalarGridSpec(
            num_scalar_prefetch=0,
            grid=grid,
            in_specs=in_specs,
            out_specs=out_specs,
            scratch_shapes=scratch_shapes),
        compiler_params=pltpu.CompilerParams(
            dimension_semantics=dim_sem,
            vmem_limit_bytes=vmem_limit),
        cost_estimate=cost,
        interpret=interpret,
    )(*args)

    # Back to the module's [L, B, Dout] layout (cheap wrapper-side relayout).
    out = out2d[:B, :N].reshape(B, num_ensemble, out_dim)
    return jnp.transpose(out, (1, 0, 2))


def ensemble_mu_readout(x, weight, bias=None, *, output_mult=1.0, base_width=None, **tile_kwargs):
    """Convenience one-shot API. For repeated calls, run prepare_ensemble_readout_params once
    (outside the jitted step) and call ensemble_mu_readout_prepared with the result so the
    weight relayout isn't an extra HBM pass per forward."""
    L, Dout, _ = weight.shape
    w2d, b2d = prepare_ensemble_readout_params(
        weight, bias, output_mult=output_mult, base_width=base_width, dtype=x.dtype)
    return ensemble_mu_readout_prepared(x, w2d, b2d, L, Dout, **tile_kwargs)


# ----------------------------------------------------------------------------------------------
# Self-test
# ----------------------------------------------------------------------------------------------

def _xavier_uniform(key, shape, dtype=jnp.float32):
    # torch._calculate_fan_in_and_fan_out for a 3-D [L, Dout, Din] tensor:
    #   fan_in = Dout * Din, fan_out = L * Din
    L, Dout, Din = shape
    bound = (6.0 / (Dout * Din + L * Din)) ** 0.5
    return jax.random.uniform(key, shape, dtype=dtype, minval=-bound, maxval=bound)


if __name__ == "__main__":
    key = jax.random.PRNGKey(0)
    k_x, k_w, k_b, k_x2, k_w2, k_b2 = jax.random.split(key, 6)
    hi = jax.lax.Precision.HIGHEST

    # ---- Small shapes consistent with the module ----
    B, Din, Dout, L = 8, 32, 16, 4
    x = jax.random.normal(k_x, (B, Din), dtype=jnp.float32)
    weight = _xavier_uniform(k_w, (L, Dout, Din))
    bias = 0.1 * jax.random.normal(k_b, (L, 1, Dout), dtype=jnp.float32)

    # 1) Default muP config (base_width = in_dim -> scale = 1.0), with bias.
    out = jax.block_until_ready(ensemble_mu_readout(x, weight, bias, output_mult=1.0))
    ref = jnp.einsum("bd,lod->lbo", x, weight, precision=hi) + bias
    assert out.shape == (L, B, Dout)
    assert jnp.allclose(out, ref, atol=1e-4, rtol=1e-4)

    # 2) Non-unity scale + no bias (exercises the bias-free kernel and the folded muP scale).
    out2 = jax.block_until_ready(ensemble_mu_readout(x, weight, None, output_mult=0.5))
    ref2 = jnp.einsum("bd,lod->lbo", 0.5 * x, weight, precision=hi)
    assert jnp.allclose(out2, ref2, atol=1e-4, rtol=1e-4)

    # 3) Forced tiling: batch padding + N (lane) tiling + K (Din) reduction tiling.
    B3, Din3, Dout3, L3 = 24, 256, 64, 4       # fused N = 256
    x3 = jax.random.normal(k_x2, (B3, Din3), dtype=jnp.float32)
    w3 = _xavier_uniform(k_w2, (L3, Dout3, Din3))
    b3 = 0.1 * jax.random.normal(k_b2, (L3, 1, Dout3), dtype=jnp.float32)
    out3 = jax.block_until_ready(ensemble_mu_readout(
        x3, w3, b3, output_mult=3.0, base_width=Din3 // 2,
        max_block_b=16, max_block_n=128, block_k_threshold=128, max_block_k=128))
    scale3 = 3.0 / (Din3 / (Din3 // 2))
    ref3 = jnp.einsum("bd,lod->lbo", scale3 * x3, w3, precision=hi) + b3
    assert out3.shape == (L3, B3, Dout3)
    assert jnp.allclose(out3, ref3, atol=1e-4, rtol=1e-4)

    print("KERNEL_OK")
</pallas_src>

<mosaic_0001>
module attributes {stable_mosaic.version = 11 : i64} {
  func.func @_fused_kernel(%arg0: i32, %arg1: i32, %arg2: memref<8x32xf32, #tpu.memory_space<vmem>>, %arg3: memref<32x64xf32, #tpu.memory_space<vmem>>, %arg4: memref<1x64xf32, #tpu.memory_space<vmem>>, %arg5: memref<8x64xf32, #tpu.memory_space<vmem>>) attributes {dimension_semantics = [#tpu.dimension_semantics<parallel>, #tpu.dimension_semantics<parallel>], iteration_bounds = array<i64: 1, 1>, scalar_prefetch = 0 : i64, scratch_operands = 0 : i64, tpu.core_type = #tpu.core_type<tc>, window_params = [{transform_indices = @transform_0, window_bounds = array<i64: 8, 32>}, {transform_indices = @transform_1, window_bounds = array<i64: 32, 64>}, {transform_indices = @transform_2, window_bounds = array<i64: 1, 64>}, {transform_indices = @transform_3, window_bounds = array<i64: 8, 64>}]} {
    %c0 = arith.constant 0 : index
    %c0_0 = arith.constant 0 : index
    %0 = vector.load %arg2[%c0, %c0_0] : memref<8x32xf32, #tpu.memory_space<vmem>>, vector<8x32xf32>
    %c0_1 = arith.constant 0 : index
    %c0_2 = arith.constant 0 : index
    %1 = vector.load %arg3[%c0_1, %c0_2] : memref<32x64xf32, #tpu.memory_space<vmem>>, vector<32x64xf32>
    %cst = arith.constant dense<0.000000e+00> : vector<8x64xf32>
    %2 = tpu.matmul %0, %1, %cst {dimension_numbers = #tpu.dot_dimension_numbers<[1], [0], [0], [1], [0, 0, 1, 1], [], []>} : vector<8x32xf32>, vector<32x64xf32>, vector<8x64xf32> -> vector<8x64xf32>
    %c0_3 = arith.constant 0 : index
    %c0_4 = arith.constant 0 : index
    %3 = vector.load %arg4[%c0_3, %c0_4] : memref<1x64xf32, #tpu.memory_space<vmem>>, vector<1x64xf32>
    %4 = vector.broadcast %3 : vector<1x64xf32> to vector<8x64xf32>
    %5 = arith.addf %2, %4 : vector<8x64xf32>
    %c0_5 = arith.constant 0 : index
    %c0_6 = arith.constant 0 : index
    %6 = vector.load %arg5[%c0_5, %c0_6] : memref<8x64xf32, #tpu.memory_space<vmem>>, vector<8x64xf32>
    tpu.vector_store %arg5[%c0_5, %c0_6], %5 {strides = array<i32>} : memref<8x64xf32, #tpu.memory_space<vmem>>, vector<8x64xf32>,
    return
  }
  func.func @transform_0(%arg0: i32, %arg1: i32) -> (i32, i32) {
    %c0_i32 = arith.constant 0 : i32
    %c0_i32_0 = arith.constant 0 : i32
    return %arg1, %c0_i32 : i32, i32
  }
  func.func @transform_1(%arg0: i32, %arg1: i32) -> (i32, i32) {
    %c0_i32 = arith.constant 0 : i32
    %c0_i32_0 = arith.constant 0 : i32
    return %c0_i32, %arg0 : i32, i32
  }
  func.func @transform_2(%arg0: i32, %arg1: i32) -> (i32, i32) {
    %c0_i32 = arith.constant 0 : i32
    %c0_i32_0 = arith.constant 0 : i32
    return %c0_i32, %arg0 : i32, i32
  }
  func.func @transform_3(%arg0: i32, %arg1: i32) -> (i32, i32) {
    %c0_i32 = arith.constant 0 : i32
    return %arg1, %arg0 : i32, i32
  }
}

</mosaic_0001>

<bundles_post_ra>
// kernel: tpu_custom_call.1
= control target key start
LH: loop header
LB: loop body
LE: loop exit
PB: predicated region body
PF: predicated region fallthrough
CT: control target
= control target key end

     0   :  { %8 = vsyncpa [#allocation3], 0  ;;  %s323_s0 = inlined_call_operand.hbm [shape: f32[8,32], index: 0, kind: input, shape index: {}]   ;;  %s324_s1 = inlined_call_operand.hbm [shape: f32[32,64], index: 1, kind: input, shape index: {}]   ;;  %s325_s2 = inlined_call_operand.vmem [shape: f32[1,64], index: 2, kind: input, shape index: {}]   ;;  %s326_s3 = inlined_call_operand.hbm [shape: f32[8,64], index: 3, kind: output, shape index: {}]  }
   0x1   :  { %9 = vsyncpa [#allocation6], 0 }
   0x2   :  { %10 = vsyncpa [#allocation4], 0  ;;  %s249_s12 = smov [#allocation2]   ;;  %s250_s14 = smov [#allocation5]  }
   0x3   :  { %s17_s13 = sshll.u32 %s249_s12, 4  ;;  %s26_s15 = sshll.u32 %s250_s14, 4  ;;  %s18_s13 = int_to_ptr.vmem [resolvable:$true] %s17_s13  ;;  %s277_s15 = int_to_ptr.vmem [resolvable:$true] %s26_s15 }
   0x4   :  { %s177_s18 = scalar_lea.hbm %s323_s0, 128 }
   0x5   :  { %p178_p0 = scmp.ne.s32.totalorder %s323_s0, %s177_s18  ;;  %p181_p1 = scmp.lt.u32.totalorder %s177_s18, %s323_s0 }
   0x7   :  { %p183_p2 = pnand %p181_p1, %p178_p0 }
   0x9   :  { %186 = shalt.err (!%p183_p2)
}
   0xa   :  { %s187_s23 = scalar_lea.vmem %s18_s13, 128  ;;  %p192_p4 = scmp.lt.s32.totalorder %s18_s13, %s18_s13 }
   0xb   :  { %p188_p3 = scmp.ne.s32.totalorder %s18_s13, %s187_s23  ;;  %p193_p5 = scmp.lt.s32.totalorder %s187_s23, %s187_s23 }
   0xd   :  { %p194_p6 = por %p193_p5, %p192_p4 }
   0xf   :  { %p195_p7 = pnand %p194_p6, %p188_p3 }
  0x11   :  { %198 = shalt.err (!%p195_p7)
}
  0x12   :  { %20 = dma.hbm_to_vmem [thread:$0]  %s323_s0, 128, %s18_s13, [#allocation3]  }
  0x13   :  { %s199_s28 = scalar_lea.hbm %s324_s1, 512 }
  0x14   :  { %p200_p8 = scmp.ne.s32.totalorder %s324_s1, %s199_s28  ;;  %p203_p9 = scmp.lt.u32.totalorder %s199_s28, %s324_s1 }
  0x16   :  { %p205_p10 = pnand %p203_p9, %p200_p8 }
  0x18   :  { %208 = shalt.err (!%p205_p10)
}
  0x19   :  { %s209_s6 = scalar_lea.vmem %s277_s15, 512  ;;  %p214_p12 = scmp.lt.s32.totalorder %s277_s15, %s277_s15 }
  0x1a   :  { %p210_p11 = scmp.ne.s32.totalorder %s277_s15, %s209_s6  ;;  %p215_p13 = scmp.lt.s32.totalorder %s209_s6, %s209_s6 }
  0x1c   :  { %p216_p0 = por %p215_p13, %p214_p12 }
  0x1e   :  { %p217_p1 = pnand %p216_p0, %p210_p11 }
  0x20   :  { %220 = shalt.err (!%p217_p1)
}
  0x21   :  { %s251_s0 = smov 128   ;;  %s252_s7 = smov 8  }
  0x22   :  { %32 = dma.hbm_to_vmem [thread:$0]  %s324_s1, 512, %s277_s15, [#allocation6], %s251_s0, %s251_s0, %s252_s7  }
  0x23   :  { %243 = dma.done.wait [#allocation3], 128  }
  0x24   :  { %244 = vsyncadd [#allocation3], 4294967168 }
  0x25   :  { %245 = dma.done.wait [#allocation6], 512  }
  0x26   :  { %246 = vsyncadd [#allocation6], 4294966784  ;;  %v253_v0 = vmov 0.0|0.0   ;;  %vm254_vm0 = vmmov 0   ;;  %v255_v1 = vmov 0.0   ;;  %v42_v2 = vld [vmem:[#allocation5] sm:$0xff] }
  0x27   :  { %163 = vmatprep.subr.bf16.mxu0 %v253_v0  ;;  %160 = vmatprep.mubr.msk.f32.mxu0 %vm254_vm0, %v255_v1  ;;  %v43_v3 = vld [vmem:[#allocation5 + $0x8] sm:$0xff]  ;;  %v44_v4 = vld [vmem:[#allocation5 + $0x10] sm:$0xff]  ;;  %v45_v6 = vld [vmem:[#allocation5 + $0x18] sm:$0xff]  ;;  %vm53_vm1 = vcmask 261120   ;;  %s256_s11 = smov [#allocation7]   ;;  %vm127_vm2 = vcmask 523264  }
  0x28   :  { %v164_v5 = vpack.c.bf16 %v43_v3, %v42_v2  ;;  %v167_v7 = vpack.c.bf16 %v45_v6, %v44_v4  ;;  %v41_v8 = vld [vmem:[#allocation2] sm:$0xff]  ;;  %s135_s12 = sshll.u32 %s256_s11, 4  ;;  %s136_s12 = int_to_ptr.vmem [resolvable:$true] %s135_s12 }
  0x29   :  { %v145_v9 = vld [vmem:[%s325_s2] ss:$0 sm:$0xff]  ;;  %s221_s13 = scalar_lea.vmem %s136_s12, 128  ;;  %p226_p3 = scmp.lt.s32.totalorder %s136_s12, %s136_s12 }
  0x2a   :  { %165 = vmatpush3.bf16.msra.mxu0 %v164_v5  ;;  %p222_p2 = scmp.ne.s32.totalorder %s136_s12, %s221_s13  ;;  %p227_p4 = scmp.lt.s32.totalorder %s221_s13, %s221_s13 }
  0x2b   :  { %166 = vmatprep.subr.bf16.mxu0 %v253_v0 }
  0x2c   :  { %p228_p5 = por %p227_p4, %p226_p3 }
  0x2e   :  { %168 = vmatpush3.bf16.msra.mxu0 %v167_v7  ;;  %p229_p6 = pnand %p228_p5, %p222_p2 }
  0x31   :  { %161 = vmatmul.mubr.msk.f32.vlgmr.msra.gmra.mrb[0].mxu0 %vm53_vm1, %v41_v8 }
 0x104   :  { %v123_v10 = vpop.f32.mrb[0].mxu0 }
 0x105   :  { %v124_v11 = vadd.f32 %v145_v9, %v123_v10  ;;  %v162_v12 = vpop.f32.mrb[1].mxu0 }
 0x107   :  { %128 = vst.msk [vmem:[#allocation7] sm:$0xff] %vm127_vm2, %v124_v11 }
 0x108   :  { %232 = shalt.err (!%p229_p6)
}
 0x109   :  { %s233_s16 = scalar_lea.hbm %s326_s3, 128 }
 0x10a   :  { %p234_p7 = scmp.ne.s32.totalorder %s326_s3, %s233_s16  ;;  %p237_p8 = scmp.lt.u32.totalorder %s233_s16, %s326_s3 }
 0x10c   :  { %p239_p9 = pnand %p237_p8, %p234_p7 }
 0x10e   :  { %242 = shalt.err (!%p239_p9)
}
 0x10f   :  { %138 = dma.vmem_to_hbm [thread:$0]  %s136_s12, 128, %s326_s3, [#allocation4]  }
 0x110   :  { %247 = dma.done.wait [#allocation4], 128  }
 0x111   :  { %248 = vsyncadd [#allocation4], 4294967168 }
 0x112   :  { %142 = vsyncpa [#allocation3], 1 }
 0x113   :  { %143 = vsyncpa [#allocation6], 1 }
 0x114   :  { %144 = vsyncpa [#allocation4], 1 }

</bundles_post_ra>
